<compile_context>
chip_gen: v5e
topology: v5e:2x2
jax: 0.10.0
libtpu: 0.0.40
codegen_flags: <defaults>
</compile_context>

<pallas_src>
import jax
import jax.numpy as jnp
from jax.experimental import pallas as pl
from jax.experimental.pallas import tpu as pltpu

EPS = 1e-5
LANE = 128


# ------------------------------ small helpers -------------------------------

def _round_up(a, b):
    return (a + b - 1) // b * b


def _pick_tile_m(m):
    # Large problems: 512-row tiles (~85%+ of HBM roofline, measured).
    if m >= 1024:
        return 512
    # Small problems: keep >=2 grid steps when possible (exercises the
    # cross-tile BN accumulator), layout-friendly multiples of 64 rows.
    return max(64, _round_up(max(m // 2, 1), 64))


def _vmem_limit(*nbytes):
    need = int(sum(int(n) for n in nbytes))
    return int(min(48 * 1024 * 1024, max(8 * 1024 * 1024, 3 * need)))


def _nbytes(x):
    return int(x.size) * x.dtype.itemsize


# ----------------------------- Pallas kernels -------------------------------

def _conv_relu_stats_kernel(p_ref, w_ref, y_ref, ssum_ref, ssq_ref):
    """y = relu(patches @ w); accumulate per-channel sum / sum-of-squares.

    Padded rows of the patch tile are all-zero, so relu(0 @ w) == 0 and they
    never pollute the statistics; no row mask is needed.
    """
    @pl.when(pl.program_id(0) == 0)
    def _():
        ssum_ref[...] = jnp.zeros_like(ssum_ref)
        ssq_ref[...] = jnp.zeros_like(ssq_ref)

    y = jnp.dot(p_ref[...], w_ref[...], preferred_element_type=jnp.float32)
    y = jnp.maximum(y, 0.0)
    ssum_ref[...] += jnp.sum(y, axis=0, keepdims=True)
    ssq_ref[...] += jnp.sum(y * y, axis=0, keepdims=True)
    y_ref[...] = y.astype(y_ref.dtype)


def _conv_add_relu_stats_kernel(p_ref, w_ref, r_ref, y_ref, ssum_ref, ssq_ref):
    """y = relu(patches @ w + residual); accumulate per-channel stats."""
    @pl.when(pl.program_id(0) == 0)
    def _():
        ssum_ref[...] = jnp.zeros_like(ssum_ref)
        ssq_ref[...] = jnp.zeros_like(ssq_ref)

    y = jnp.dot(p_ref[...], w_ref[...], preferred_element_type=jnp.float32)
    y = jnp.maximum(y + r_ref[...], 0.0)
    ssum_ref[...] += jnp.sum(y, axis=0, keepdims=True)
    ssq_ref[...] += jnp.sum(y * y, axis=0, keepdims=True)
    y_ref[...] = y.astype(y_ref.dtype)


def _bn_affine_kernel(z_ref, sc_ref, sh_ref, o_ref):
    """out = z * scale + shift (per-channel affine, precomputed constants)."""
    o_ref[...] = (z_ref[...] * sc_ref[...] + sh_ref[...]).astype(o_ref.dtype)


# ------------------------------- glue (JAX) ---------------------------------

def _im2col_3x3(x_nhwc, stride):
    """3x3 patches (pad=1) -> [N*Ho*Wo, 9*C], tap-major (kh, kw, cin)."""
    N, H, W, C = x_nhwc.shape
    xp = jnp.pad(x_nhwc, ((0, 0), (1, 1), (1, 1), (0, 0)))
    Ho = (H - 1) // stride + 1
    Wo = (W - 1) // stride + 1
    taps = []
    for dh in range(3):
        for dw in range(3):
            taps.append(xp[:, dh:dh + stride * (Ho - 1) + 1:stride,
                           dw:dw + stride * (Wo - 1) + 1:stride, :])
    p = jnp.concatenate(taps, axis=-1)              # [N, Ho, Wo, 9*C]
    return p.reshape(N * Ho * Wo, 9 * C), Ho, Wo


def _w3x3_matrix(w_oihw, cin_pad, cout_pad):
    """OIHW (Cout, Cin, 3, 3) -> padded (9*cin_pad, cout_pad), tap-major."""
    w = jnp.transpose(w_oihw, (2, 3, 1, 0)).astype(jnp.float32)  # (3,3,Ci,Co)
    kh, kw, cin, cout = w.shape
    w = jnp.pad(w, ((0, 0), (0, 0), (0, cin_pad - cin), (0, cout_pad - cout)))
    return w.reshape(kh * kw * cin_pad, cout_pad)


def _pad_vec(v, n):
    return jnp.pad(v.astype(jnp.float32), (0, n - v.shape[0]))


def init_resblock_params(key, in_channels, out_channels, stride=1):
    ks = jax.random.split(key, 8)
    params = {
        "w1": 0.1 * jax.random.normal(ks[0], (out_channels, in_channels, 3, 3),
                                      jnp.float32),
        "g1": 1.0 + 0.1 * jax.random.normal(ks[1], (out_channels,), jnp.float32),
        "b1": 0.1 * jax.random.normal(ks[2], (out_channels,), jnp.float32),
        "w2": 0.1 * jax.random.normal(ks[3], (out_channels, out_channels, 3, 3),
                                      jnp.float32),
        "g2": 1.0 + 0.1 * jax.random.normal(ks[4], (out_channels,), jnp.float32),
        "b2": 0.1 * jax.random.normal(ks[5], (out_channels,), jnp.float32),
    }
    if stride != 1 or in_channels != out_channels:
        params["wsc"] = 0.1 * jax.random.normal(
            ks[6], (out_channels, in_channels, 1, 1), jnp.float32)
    return params


def resblock_forward(x_nchw, params, stride=1):
    N, Cin, H, W = x_nchw.shape
    Cout = params["w1"].shape[0]
    is_bottleneck = "wsc" in params
    if not is_bottleneck:
        assert stride == 1 and Cin == Cout, (
            "identity shortcut requires stride == 1 and in == out channels")

    Cout_p = _round_up(Cout, LANE)                 # lane-dense channel dim
    x_f32 = jnp.transpose(x_nchw, (0, 2, 3, 1)).astype(jnp.float32)   # NHWC
    x_bf16 = x_f32.astype(jnp.bfloat16)

    # ---------- pass 1: y1 = relu(conv1(x)), accumulate bn1 statistics -------
    p1, Ho, Wo = _im2col_3x3(x_bf16, stride)
    M = N * Ho * Wo
    tile_m = _pick_tile_m(M)
    M_p = _round_up(M, tile_m)
    grid_m = M_p // tile_m
    p1 = jnp.pad(p1, ((0, M_p - M), (0, 0)))
    K1 = p1.shape[1]
    w1 = _w3x3_matrix(params["w1"], Cin, Cout_p).astype(jnp.bfloat16)

    stat_shape = jax.ShapeDtypeStruct((1, Cout_p), jnp.float32)
    stat_spec = pl.BlockSpec((1, Cout_p), lambda i: (0, 0))
    row_spec = lambda width: pl.BlockSpec((tile_m, width), lambda i: (i, 0))
    full_spec = lambda shape: pl.BlockSpec(shape, lambda i: (0, 0))

    y1, ssum1, ssq1 = pl.pallas_call(
        _conv_relu_stats_kernel,
        out_shape=(jax.ShapeDtypeStruct((M_p, Cout_p), jnp.bfloat16),
                   stat_shape, stat_shape),
        grid=(grid_m,),
        in_specs=[row_spec(K1), full_spec((K1, Cout_p))],
        out_specs=(row_spec(Cout_p), stat_spec, stat_spec),
        compiler_params=pltpu.CompilerParams(
            dimension_semantics=("arbitrary",),   # stats accumulator resident
            vmem_limit_bytes=_vmem_limit(tile_m * K1 * 2, _nbytes(w1),
                                         tile_m * Cout_p * 2)),
        cost_estimate=pl.CostEstimate(
            flops=2 * M_p * K1 * Cout_p, transcendentals=0,
            bytes_accessed=_nbytes(p1) + _nbytes(w1) + M_p * Cout_p * 2),
    )(p1, w1)

    # bn1 batch statistics -> per-channel affine constants (f32, host-of-loop).
    mean1 = (ssum1 / M).reshape(-1)
    var1 = jnp.maximum((ssq1 / M).reshape(-1) - mean1 * mean1, 0.0)
    inv1 = jax.lax.rsqrt(var1 + EPS)
    g1 = _pad_vec(params["g1"], Cout_p)
    b1 = _pad_vec(params["b1"], Cout_p)
    scale1 = g1 * inv1                     # (Cout_p,)
    shift1 = b1 - mean1 * scale1           # (Cout_p,)

    # Boundary-exact bn1 folding into conv2:
    #   conv2(pad0(scale1*y + shift1))
    #     = (w2*scale1) conv pad0(y)  +  sum_tap inside(p,tap) * c[tap, :]
    # The first term folds scale1 into the weights (zero padding matches on
    # both sides).  The second term is realized by concatenating 9 indicator
    # columns (im2col of a ones-image) to the patches and c to the weights.
    w2m = _w3x3_matrix(params["w2"], Cout_p, Cout_p)          # f32 (9*Cp, Cp)
    w2_scaled = (w2m * jnp.tile(scale1, 9)[:, None]).astype(jnp.bfloat16)
    c_taps = jnp.sum(w2m.reshape(9, Cout_p, Cout_p) * shift1[None, :, None],
                     axis=1).astype(jnp.bfloat16)             # (9, Cout_p)

    # ---------- pass 2: z = relu(conv2(bn1(y1)) + residual), bn2 stats -------
    p2, _, _ = _im2col_3x3(y1[:M].reshape(N, Ho, Wo, Cout_p), 1)      # bf16
    ind, _, _ = _im2col_3x3(jnp.ones((N, Ho, Wo, 1), jnp.bfloat16), 1)  # (M,9)

    if is_bottleneck:
        # Fold the 1x1 strided shortcut into the same matmul (concat along K).
        x_s = x_bf16[:, ::stride, ::stride, :].reshape(M, Cin)
        wsc = jnp.transpose(params["wsc"], (2, 3, 1, 0)).reshape(Cin, Cout)
        wsc = jnp.pad(wsc.astype(jnp.float32),
                      ((0, 0), (0, Cout_p - Cout))).astype(jnp.bfloat16)
        p2 = jnp.concatenate([p2, ind, x_s], axis=1)
        w2c = jnp.concatenate([w2_scaled, c_taps, wsc], axis=0)
        kernel2 = _conv_relu_stats_kernel
        extra_in, extra_specs = (), ()
    else:
        p2 = jnp.concatenate([p2, ind], axis=1)
        w2c = jnp.concatenate([w2_scaled, c_taps], axis=0)
        kernel2 = _conv_add_relu_stats_kernel
        r = jnp.pad(x_f32.reshape(M, Cin),
                    ((0, M_p - M), (0, Cout_p - Cin)))        # f32 identity
        extra_in, extra_specs = (r,), (row_spec(Cout_p),)

    p2 = jnp.pad(p2, ((0, M_p - M), (0, 0)))
    K2 = p2.shape[1]

    z, ssum2, ssq2 = pl.pallas_call(
        kernel2,
        out_shape=(jax.ShapeDtypeStruct((M_p, Cout_p), jnp.float32),
                   stat_shape, stat_shape),
        grid=(grid_m,),
        in_specs=[row_spec(K2), full_spec((K2, Cout_p)), *extra_specs],
        out_specs=(row_spec(Cout_p), stat_spec, stat_spec),
        compiler_params=pltpu.CompilerParams(
            dimension_semantics=("arbitrary",),
            vmem_limit_bytes=_vmem_limit(tile_m * K2 * 2, _nbytes(w2c),
                                         2 * tile_m * Cout_p * 4)),
        cost_estimate=pl.CostEstimate(
            flops=2 * M_p * K2 * Cout_p, transcendentals=0,
            bytes_accessed=_nbytes(p2) + _nbytes(w2c) + M_p * Cout_p * 4),
    )(p2, w2c, *extra_in)

    # ---------- pass 3: out = bn2(z) as a per-channel FMA (parallel) ---------
    mean2 = (ssum2 / M).reshape(-1)
    var2 = jnp.maximum((ssq2 / M).reshape(-1) - mean2 * mean2, 0.0)
    inv2 = jax.lax.rsqrt(var2 + EPS)
    g2 = _pad_vec(params["g2"], Cout_p)
    b2 = _pad_vec(params["b2"], Cout_p)
    scale2 = (g2 * inv2).reshape(1, Cout_p)
    shift2 = (b2 - mean2 * g2 * inv2).reshape(1, Cout_p)

    out = pl.pallas_call(
        _bn_affine_kernel,
        out_shape=jax.ShapeDtypeStruct((M_p, Cout_p), jnp.float32),
        grid=(grid_m,),
        in_specs=[row_spec(Cout_p), full_spec((1, Cout_p)),
                  full_spec((1, Cout_p))],
        out_specs=row_spec(Cout_p),
        compiler_params=pltpu.CompilerParams(
            dimension_semantics=("parallel",),
            vmem_limit_bytes=_vmem_limit(2 * tile_m * Cout_p * 4)),
    )(z, scale2, shift2)

    out = out[:M, :Cout].reshape(N, Ho, Wo, Cout)
    return jnp.transpose(out, (0, 3, 1, 2))


# ------------------------- pure-JAX reference (check) ------------------------

def _ref_forward(x_nchw, params, stride):
    # Mirrors the kernel's mixed precision: conv inputs cast to bf16 with f32
    # accumulation; all BN math in f32.
    x = jnp.transpose(x_nchw, (0, 2, 3, 1)).astype(jnp.float32)

    def conv(inp, w_oihw, s):
        k = w_oihw.shape[-1]
        w = jnp.transpose(w_oihw, (2, 3, 1, 0))      # HWIO
        pad = 1 if k == 3 else 0
        return jax.lax.conv_general_dilated(
            inp.astype(jnp.bfloat16), w.astype(jnp.bfloat16), (s, s),
            ((pad, pad), (pad, pad)),
            dimension_numbers=("NHWC", "HWIO", "NHWC"),
            preferred_element_type=jnp.float32)

    def bn(y, g, b):
        mean = jnp.mean(y, axis=(0, 1, 2), keepdims=True)
        var = jnp.mean(jnp.square(y - mean), axis=(0, 1, 2), keepdims=True)
        return (y - mean) * jax.lax.rsqrt(var + EPS) * g + b

    out = bn(jnp.maximum(conv(x, params["w1"], stride), 0.0),
             params["g1"], params["b1"])
    out = conv(out, params["w2"], 1)
    res = conv(x, params["wsc"], stride) if "wsc" in params else x
    out = bn(jnp.maximum(out + res, 0.0), params["g2"], params["b2"])
    return jnp.transpose(out, (0, 3, 1, 2))


def _check(out, ref):
    max_err = float(jnp.max(jnp.abs(out - ref)))
    mean_err = float(jnp.mean(jnp.abs(out - ref)))
    # bf16 matmul inputs vs f32-normalized reference -> loose-but-meaningful
    # tolerances (outputs are unit-scale after the final BN).
    assert jnp.allclose(out, ref, rtol=1e-1, atol=1e-1), (max_err, mean_err)
    assert mean_err < 3e-2, (max_err, mean_err)


# --------------------------------- main --------------------------------------

if __name__ == "__main__":
    key = jax.random.PRNGKey(0)

    # Config A: bottleneck path (stride 2, channel expansion).
    kx, kp = jax.random.split(jax.random.fold_in(key, 0))
    N, Cin, Cout, H, W, stride = 2, 4, 8, 16, 16, 2
    x = jax.random.normal(kx, (N, Cin, H, W), jnp.float32)
    params = init_resblock_params(kp, Cin, Cout, stride)
    out = jax.block_until_ready(resblock_forward(x, params, stride))
    ref = jax.block_until_ready(_ref_forward(x, params, stride))
    assert out.shape == ref.shape == (N, Cout, H // stride, W // stride)
    _check(out, ref)

    # Config B: identity-shortcut path (stride 1, Cin == Cout) with a row
    # count that is not a multiple of the tile (exercises zero pad rows).
    kx, kp = jax.random.split(jax.random.fold_in(key, 1))
    N, C, H, W = 2, 8, 9, 9
    x = jax.random.normal(kx, (N, C, H, W), jnp.float32)
    params = init_resblock_params(kp, C, C, 1)
    out = jax.block_until_ready(resblock_forward(x, params, 1))
    ref = jax.block_until_ready(_ref_forward(x, params, 1))
    assert out.shape == ref.shape == (N, C, H, W)
    _check(out, ref)

    print("KERNEL_OK")
</pallas_src>

<mosaic_0001>
module attributes {stable_mosaic.version = 11 : i64} {
  func.func @_conv_relu_stats_kernel(%arg0: i32, %arg1: memref<64x36xbf16, #tpu.memory_space<vmem>>, %arg2: memref<36x128xbf16, #tpu.memory_space<vmem>>, %arg3: memref<64x128xbf16, #tpu.memory_space<vmem>>, %arg4: memref<1x128xf32, #tpu.memory_space<vmem>>, %arg5: memref<1x128xf32, #tpu.memory_space<vmem>>) attributes {dimension_semantics = [#tpu.dimension_semantics<arbitrary>], iteration_bounds = array<i64: 2>, scalar_prefetch = 0 : i64, scratch_operands = 0 : i64, tpu.core_type = #tpu.core_type<tc>, window_params = [{transform_indices = @transform_0, window_bounds = array<i64: 64, 36>}, {pipeline_mode = #tpu.pipeline_mode<synchronous>, transform_indices = @transform_1, window_bounds = array<i64: 36, 128>}, {transform_indices = @transform_2, window_bounds = array<i64: 64, 128>}, {pipeline_mode = #tpu.pipeline_mode<synchronous>, transform_indices = @transform_3, window_bounds = array<i64: 1, 128>}, {pipeline_mode = #tpu.pipeline_mode<synchronous>, transform_indices = @transform_4, window_bounds = array<i64: 1, 128>}]} {
    %c0_i32 = arith.constant 0 : i32
    %0 = arith.cmpi eq, %arg0, %c0_i32 : i32
    %1 = arith.extui %0 : i1 to i32
    %c0_i32_0 = arith.constant 0 : i32
    %2 = arith.cmpi ne, %1, %c0_i32_0 : i32
    scf.if %2 {
      %cst_17 = arith.constant 0.000000e+00 : f32
      %21 = vector.broadcast %cst_17 : f32 to vector<1x128xf32>
      %c0_18 = arith.constant 0 : index
      %c0_19 = arith.constant 0 : index
      %22 = vector.load %arg4[%c0_18, %c0_19] : memref<1x128xf32, #tpu.memory_space<vmem>>, vector<1x128xf32>
      tpu.vector_store %arg4[%c0_18, %c0_19], %21 {strides = array<i32>} : memref<1x128xf32, #tpu.memory_space<vmem>>, vector<1x128xf32>,
      %cst_20 = arith.constant 0.000000e+00 : f32
      %23 = vector.broadcast %cst_20 : f32 to vector<1x128xf32>
      %c0_21 = arith.constant 0 : index
      %c0_22 = arith.constant 0 : index
      %24 = vector.load %arg5[%c0_21, %c0_22] : memref<1x128xf32, #tpu.memory_space<vmem>>, vector<1x128xf32>
      tpu.vector_store %arg5[%c0_21, %c0_22], %23 {strides = array<i32>} : memref<1x128xf32, #tpu.memory_space<vmem>>, vector<1x128xf32>,
    } else {
    }
    %c0 = arith.constant 0 : index
    %c0_1 = arith.constant 0 : index
    %3 = vector.load %arg1[%c0, %c0_1] : memref<64x36xbf16, #tpu.memory_space<vmem>>, vector<64x36xbf16>
    %c0_2 = arith.constant 0 : index
    %c0_3 = arith.constant 0 : index
    %4 = vector.load %arg2[%c0_2, %c0_3] : memref<36x128xbf16, #tpu.memory_space<vmem>>, vector<36x128xbf16>
    %cst = arith.constant dense<0.000000e+00> : vector<64x128xf32>
    %5 = tpu.matmul %3, %4, %cst {dimension_numbers = #tpu.dot_dimension_numbers<[1], [0], [0], [1], [0, 0, 1, 1], [], []>} : vector<64x36xbf16>, vector<36x128xbf16>, vector<64x128xf32> -> vector<64x128xf32>
    %cst_4 = arith.constant 0.000000e+00 : f32
    %6 = vector.broadcast %cst_4 : f32 to vector<64x128xf32>
    %7 = arith.maximumf %5, %6 : vector<64x128xf32>
    %c0_5 = arith.constant 0 : index
    %c0_6 = arith.constant 0 : index
    %8 = vector.load %arg4[%c0_5, %c0_6] : memref<1x128xf32, #tpu.memory_space<vmem>>, vector<1x128xf32>
    %cst_7 = arith.constant dense<0.000000e+00> : vector<128xf32>
    %9 = vector.multi_reduction <add>, %7, %cst_7 [0] : vector<64x128xf32> to vector<128xf32>
    %10 = vector.shape_cast %9 : vector<128xf32> to vector<1x128xf32>
    %11 = arith.addf %8, %10 : vector<1x128xf32>
    %c0_8 = arith.constant 0 : index
    %c0_9 = arith.constant 0 : index
    %12 = vector.load %arg4[%c0_8, %c0_9] : memref<1x128xf32, #tpu.memory_space<vmem>>, vector<1x128xf32>
    tpu.vector_store %arg4[%c0_8, %c0_9], %11 {strides = array<i32>} : memref<1x128xf32, #tpu.memory_space<vmem>>, vector<1x128xf32>,
    %c0_10 = arith.constant 0 : index
    %c0_11 = arith.constant 0 : index
    %13 = vector.load %arg5[%c0_10, %c0_11] : memref<1x128xf32, #tpu.memory_space<vmem>>, vector<1x128xf32>
    %14 = arith.mulf %7, %7 : vector<64x128xf32>
    %cst_12 = arith.constant dense<0.000000e+00> : vector<128xf32>
    %15 = vector.multi_reduction <add>, %14, %cst_12 [0] : vector<64x128xf32> to vector<128xf32>
    %16 = vector.shape_cast %15 : vector<128xf32> to vector<1x128xf32>
    %17 = arith.addf %13, %16 : vector<1x128xf32>
    %c0_13 = arith.constant 0 : index
    %c0_14 = arith.constant 0 : index
    %18 = vector.load %arg5[%c0_13, %c0_14] : memref<1x128xf32, #tpu.memory_space<vmem>>, vector<1x128xf32>
    tpu.vector_store %arg5[%c0_13, %c0_14], %17 {strides = array<i32>} : memref<1x128xf32, #tpu.memory_space<vmem>>, vector<1x128xf32>,
    %19 = arith.truncf %7 : vector<64x128xf32> to vector<64x128xbf16>
    %c0_15 = arith.constant 0 : index
    %c0_16 = arith.constant 0 : index
    %20 = vector.load %arg3[%c0_15, %c0_16] : memref<64x128xbf16, #tpu.memory_space<vmem>>, vector<64x128xbf16>
    tpu.vector_store %arg3[%c0_15, %c0_16], %19 {strides = array<i32>} : memref<64x128xbf16, #tpu.memory_space<vmem>>, vector<64x128xbf16>,
    return
  }
  func.func @transform_0(%arg0: i32) -> (i32, i32) {
    %c0_i32 = arith.constant 0 : i32
    %c0_i32_0 = arith.constant 0 : i32
    return %arg0, %c0_i32 : i32, i32
  }
  func.func @transform_1(%arg0: i32) -> (i32, i32) {
    %c0_i32 = arith.constant 0 : i32
    %c0_i32_0 = arith.constant 0 : i32
    %c0_i32_1 = arith.constant 0 : i32
    return %c0_i32, %c0_i32_0 : i32, i32
  }
  func.func @transform_2(%arg0: i32) -> (i32, i32) {
    %c0_i32 = arith.constant 0 : i32
    %c0_i32_0 = arith.constant 0 : i32
    return %arg0, %c0_i32 : i32, i32
  }
  func.func @transform_3(%arg0: i32) -> (i32, i32) {
    %c0_i32 = arith.constant 0 : i32
    %c0_i32_0 = arith.constant 0 : i32
    %c0_i32_1 = arith.constant 0 : i32
    return %c0_i32, %c0_i32_0 : i32, i32
  }
  func.func @transform_4(%arg0: i32) -> (i32, i32) {
    %c0_i32 = arith.constant 0 : i32
    %c0_i32_0 = arith.constant 0 : i32
    %c0_i32_1 = arith.constant 0 : i32
    return %c0_i32, %c0_i32_0 : i32, i32
  }
}

</mosaic_0001>

<bundles_post_ra>
// kernel: tpu_custom_call.1
= control target key start
LH: loop header
LB: loop body
LE: loop exit
PB: predicated region body
PF: predicated region fallthrough
CT: control target
= control target key end

     0   :  { %10 = vsyncpa [#allocation3], 0  ;;  %s903_s0 = inlined_call_operand.vmem [shape: bf16[128,36], index: 0, kind: input, shape index: {}]   ;;  %s904_s1 = inlined_call_operand.vmem [shape: bf16[36,128], index: 1, kind: input, shape index: {}]   ;;  %s905_s2 = inlined_call_operand.hbm [shape: bf16[128,128], index: 2, kind: output, shape index: {0}]   ;;  %s906_s3 = inlined_call_operand.hbm [shape: f32[1,128], index: 3, kind: output, shape index: {1}]   ;;  %s907_s4 = inlined_call_operand.hbm [shape: f32[1,128], index: 4, kind: output, shape index: {2}]  }
   0x1   :  { %12 = vsyncpa [#allocation3 + $0x1], 0 }
   0x2   :  { %13 = vsyncpa [#allocation5], 0  ;;  %s779_s15 = smov 0   ;;  %s781_s16 = smov 0  }
   0x3   :  { %s783_s17 = smov 0   ;;  %s785_s18 = smov 0  }
   0x4 LB: > { %s800_s19 = sadd.s32 4294967295, %s747_s18   ;;  %s485_s20 = sadd.s32 4294967294, %s747_s18   ;;  %s747_s18 = sphi %s785_s18, %s913_s18   ;;  %s743_s17 = sphi %s783_s17, %s912_s17   ;;  %s739_s16 = sphi %s781_s16, %s911_s16   ;;  %s735_s15 = sphi %s779_s15, %s910_s15  }
   0x5   : > { %s804_s21 = sadd.s32 1, %s747_s18   ;;  %s73_s22 = sadd.s32 1, %s743_s17 }
   0x6   : > { %s70_s23 = ssub.s32 %s747_s18, %s804_s21  ;;  %p83_p0 = scmp.ne.s32.totalorder %s743_s17, %s739_s16 }
   0x7   : > { %p71_p1 = scmp.eq.s32.totalorder %s70_s23, 0  ;;  %p84_p2 = scmp.eq.s32.totalorder %s800_s19, 1 }
   0x8   : > { %p89_p3 = scmp.ne.s32.totalorder %s739_s16, %s735_s15  ;;  %p90_p4 = scmp.eq.s32.totalorder %s485_s20, 1 }
   0x9   : > { %s815_s24 = scalar_select %p71_p1, %s743_s17, %s73_s22  }
   0xa   : > { %p819_p5 = por %p84_p2, %p83_p0  ;;  %p823_p6 = por %p90_p4, %p89_p3 }
   0xb   : > { %p488_p7 = scmp.ge.s32.totalorder %s747_s18, 1  ;;  %p162_p8 = scmp.lt.s32.totalorder %s747_s18, 3 }
   0xd   : > { %p163_p9 = pnand %p488_p7, %p162_p8 }
   0xe   : > { %s181_s27 = sand.u32 (!%p163_p9), 1, %s739_s16   ;;  %s490_s28 = sshll.u32 (!%p163_p9), %s800_s19, 3 }
   0xf   : > { %166 = sbr.rel (%p163_p9) target bundleno = 215 (0xd7), region = 28  ;;  %s489_s29 = sshll.u32 (!%p163_p9), %s181_s27, 5 }
  0x10   : > { %p189_p10 = scmp.lt.s32.totalorder (!%p163_p9), %s490_s28, 15  ;;  %s836_s8 = scalar_lea.vmem (!%p163_p9), [#allocation2], %s489_s29 }
  0x11   : > { %p492_p11 = scmp.ne.s32.totalorder (!%p163_p9), %s800_s19, 0 }
  0x14   : > { %s915_s28 = smov (!%p189_p10, %s490_s28), 15  ;;  %199 = sbr.rel (%p492_p11) target bundleno = 28 (0x1c), region = 32 }
  0x15   : > { %s491_s30 = sshll.u32 %s915_s28, 2 }
  0x16   : > { %s192_s7 = scalar_lea.vmem %s903_s0, %s491_s30 }
  0x19   : > { %v749_v0 = vmov 0.0  }
  0x1a   : > { %200 = vst [vmem:[#allocation4] sm:$0x1] %v749_v0 }
  0x1b   : > { %201 = vst [vmem:[#allocation6] sm:$0x1] %v749_v0 }
  0x1c PF: > { %v214_v1 = vld [vmem:[%s904_s1 + $0x10] sm:$0x3]  ;;  %vm263_vm0 = vcmask 1041408   ;;  %v535_v5 = vld [vmem:[%s904_s1 + $0x8] sm:$0xff]  ;;  %v534_v6 = vld [vmem:[%s904_s1] sm:$0xff]  ;;  %vm250_vm1 = vcmask 293888  }
  0x1d   : > { %v244_v2 = vunpack.c.l.b16 %v214_v1  ;;  %v530_v7 = vld [vmem:[%s192_s7] sm:$0xff]  ;;  %v531_v8 = vld [vmem:[%s192_s7 + $0x8] sm:$0xff]  ;;  %v532_v9 = vld [vmem:[%s192_s7 + $0x10] sm:$0xff]  ;;  %s536_s20 = sshll.u32 %s800_s19, 5  ;;  %s373_s29 = sshll.u32 %s836_s8, 4  ;;  %s855_s29 = int_to_ptr.vmem [resolvable:$true] %s373_s29 }
  0x1e   : > { %v533_v10 = vld [vmem:[%s192_s7 + $0x18] sm:$0xff]  ;;  %s372_s28 = scalar_lea.hbm %s905_s2, %s536_s20  ;;  %s361_s5 = scalar_lea.sflag [#allocation3], %s181_s27 }
  0x1f   : > { %v247_v3 = vpack.c.b16 %v244_v2, %v244_v2  ;;  %s375_s30 = sshll.u32 %s372_s28, 4  ;;  %s645_s11 = scalar_lea.hbm %s905_s2, 64  ;;  %s376_s30 = int_to_ptr.hbm [resolvable:$true] %s375_s30 }
  0x20   : > { %s639_s6 = sshra.s32 %s376_s30, 4  ;;  %s640_s6 = int_to_ptr.hbm [resolvable:$true] %s639_s6 }
  0x21   : > { %v265_v4 = vsel %vm263_vm0, %v247_v3, 0  ;;  %s641_s7 = scalar_lea.hbm %s640_s6, 32  ;;  %p646_p1 = scmp.lt.s32.totalorder %s640_s6, %s905_s2 }
  0x22   : > { %272 = vmatpush.bf16.msra.mxu0 %v265_v4  ;;  %560 = vmatpush.bf16.msra.mxu1 %v265_v4  ;;  %p642_p12 = scmp.ne.s32.totalorder %s640_s6, %s641_s7  ;;  %p647_p3 = scmp.lt.s32.totalorder %s645_s11, %s641_s7 }
  0x23   : > { %561 = vmatpush.bf16.msra.mxu2 %v265_v4  ;;  %562 = vmatpush.bf16.msra.mxu3 %v265_v4 }
  0x24   : > { %p643_p13 = pnand %p642_p12, %p819_p5  ;;  %p648_p4 = por %p647_p3, %p646_p1 }
  0x26   : > { %273 = vmatpush.bf16.msra.mxu0 %v535_v5  ;;  %563 = vmatpush.bf16.msra.mxu1 %v535_v5  ;;  %p644_p0 = pneg %p643_p13 }
  0x27   : > { %564 = vmatpush.bf16.msra.mxu2 %v535_v5  ;;  %565 = vmatpush.bf16.msra.mxu3 %v535_v5 }
  0x28   : > { %p649_p7 = pnand %p648_p4, %p644_p0 }
  0x2a   : > { %274 = vmatpush.bf16.msra.mxu0 %v534_v6  ;;  %566 = vmatpush.bf16.msra.mxu1 %v534_v6 }
  0x2b   : > { %567 = vmatpush.bf16.msra.mxu2 %v534_v6  ;;  %568 = vmatpush.bf16.msra.mxu3 %v534_v6 }
  0x2d   : > { %517 = vmatmul.msk.bf16.vlgmr.msra.gmra.mxu0 %vm250_vm1, %v530_v7  ;;  %518 = vmatmul.msk.bf16.vlgmr.msra.gmra.mxu1 %vm250_vm1, %v531_v8 }
  0x2e   : > { %519 = vmatmul.msk.bf16.vlgmr.msra.gmra.mxu2 %vm250_vm1, %v532_v9  ;;  %520 = vmatmul.msk.bf16.vlgmr.msra.gmra.mxu3 %vm250_vm1, %v533_v10 }
  0xaa   : > { %v276_v11 = vpop.f32.mrf.mxu0  ;;  %v281_v12 = vpop.f32.mrf.mxu1 }
  0xab   : > { %v296_v13 = vmax.f32 %v276_v11, 0.0  ;;  %v298_v18 = vmax.f32 %v281_v12, 0.0 }
  0xad   : > { %v321_v21 = vmul.f32 %v296_v13, %v296_v13  ;;  %v323_v26 = vmul.f32 %v298_v18, %v298_v18 }
  0xb1   : > { %v286_v14 = vpop.f32.mrf.mxu2  ;;  %v291_v15 = vpop.f32.mrf.mxu3 }
  0xb2   : > { %v278_v16 = vpop.f32.mrf.mxu0  ;;  %v283_v17 = vpop.f32.mrf.mxu1  ;;  %v300_v27 = vmax.f32 %v286_v14, 0.0  ;;  %v302_v35 = vmax.f32 %v291_v15, 0.0 }
  0xb3   : > { %v297_v19 = vmax.f32 %v278_v16, 0.0  ;;  %v299_v20 = vmax.f32 %v283_v17, 0.0 }
  0xb4   : > { %v325_v38 = vmul.f32 %v300_v27, %v300_v27  ;;  %v327_v46 = vmul.f32 %v302_v35, %v302_v35 }
  0xb5   : > { %v305_v22 = vadd.f32 %v297_v19, %v296_v13  ;;  %v322_v23 = vmul.f32 %v297_v19, %v297_v19  ;;  %v540_v24 = vpack.c.bf16 %v297_v19, %v296_v13  ;;  %v545_v25 = vpack.c.bf16 %v299_v20, %v298_v18 }
  0xb6   : > { %v324_v31 = vmul.f32 %v299_v20, %v299_v20 }
  0xb7   : > { %v329_v28 = vadd.f32 %v322_v23, %v321_v21  ;;  %541 = vst [vmem:[%s836_s8] sm:$0xff] %v540_v24   ;;  %v306_v29 = vadd.f32 %v305_v22, %v298_v18 }
  0xb8   : > { %557 = vst [vmem:[%s836_s8 + $0x8] sm:$0xff] %v545_v25  }
  0xb9   : > { %v307_v30 = vadd.f32 %v306_v29, %v299_v20  ;;  %v330_v32 = vadd.f32 %v329_v28, %v323_v26  ;;  %v288_v33 = vpop.f32.mrf.mxu2  ;;  %v293_v34 = vpop.f32.mrf.mxu3 }
  0xba   : > { %v301_v36 = vmax.f32 %v288_v33, 0.0  ;;  %v303_v37 = vmax.f32 %v293_v34, 0.0 }
  0xbb   : > { %v331_v39 = vadd.f32 %v330_v32, %v324_v31  ;;  %v308_v40 = vadd.f32 %v307_v30, %v300_v27 }
  0xbc   : > { %v550_v41 = vpack.c.bf16 %v301_v36, %v300_v27  ;;  %v555_v42 = vpack.c.bf16 %v303_v37, %v302_v35  ;;  %v326_v44 = vmul.f32 %v301_v36, %v301_v36 }
  0xbd   : > { %v309_v43 = vadd.f32 %v308_v40, %v301_v36  ;;  %v332_v45 = vadd.f32 %v331_v39, %v325_v38 }
  0xbe   : > { %558 = vst [vmem:[%s836_s8 + $0x10] sm:$0xff] %v550_v41  }
  0xbf   : > { %v333_v47 = vadd.f32 %v332_v45, %v326_v44  ;;  %v310_v48 = vadd.f32 %v309_v43, %v302_v35  ;;  %559 = vst [vmem:[%s836_s8 + $0x18] sm:$0xff] %v555_v42  }
  0xc0   : > { %652 = shalt.err (!%p649_p7)
}
  0xc1   : > { %s750_s27 = smov 64   ;;  %s751_s8 = smov 4   ;;  %v311_v49 = vadd.f32 %v310_v48, %v303_v37  ;;  %v328_v50 = vmul.f32 %v303_v37, %v303_v37  ;;  %v334_v51 = vadd.f32 %v333_v47, %v327_v46  ;;  %v304_v62 = vld [vmem:[#allocation4] sm:$0x1]  ;;  %v320_v1 = vld [vmem:[#allocation6] sm:$0x1] }
  0xc2   : > { %569 = dma.vmem_to_hbm [thread:$0]  (%p819_p5), %s855_s29, 512, %s376_s30, %s361_s5, %s750_s27, %s750_s27, %s751_s8  }
  0xc3   : > { %v312_v52 = vrot.slane %v311_v49, 4  ;;  %v335_v53 = vadd.f32 %v334_v51, %v328_v50  ;;  %s752_s14 = smov [#allocation4]   ;;  %s390_s25 = sshll.u32 %s906_s3, 4  ;;  %s391_s25 = int_to_ptr.hbm [resolvable:$true] %s390_s25 }
  0xc4   : > { %s388_s20 = sshll.u32 %s752_s14, 4  ;;  %s753_s28 = smov [#allocation6]   ;;  %s389_s20 = int_to_ptr.vmem [resolvable:$true] %s388_s20 }
  0xc5   : > { %v313_v54 = vadd.f32 %v312_v52, %v311_v49  ;;  %v336_v55 = vrot.slane %v335_v53, 4  ;;  %s400_s29 = sshll.u32 %s753_s28, 4  ;;  %s402_s6 = sshll.u32 %s907_s4, 4  ;;  %s401_s29 = int_to_ptr.vmem [resolvable:$true] %s400_s29  ;;  %s403_s6 = int_to_ptr.hbm [resolvable:$true] %s402_s6 }
  0xc7   : > { %v314_v56 = vrot.slane %v313_v54, 2  ;;  %v337_v57 = vadd.f32 %v336_v55, %v335_v53 }
  0xc9   : > { %v338_v58 = vrot.slane %v337_v57, 2  ;;  %v315_v59 = vadd.f32 %v314_v56, %v313_v54 }
  0xcb   : > { %v316_v60 = vrot.slane %v315_v59, 1  ;;  %v339_v61 = vadd.f32 %v338_v58, %v337_v57 }
  0xcd   : > { %v317_v63 = vadd.f32 %v316_v60, %v315_v59  ;;  %v340_v0 = vrot.slane %v339_v61, 1 }
  0xcf   : > { %v318_v2 = vadd.f32 %v317_v63, %v304_v62  ;;  %v341_v3 = vadd.f32 %v340_v0, %v339_v61 }
  0xd1   : > { %319 = vst [vmem:[#allocation4] sm:$0x1] %v318_v2  ;;  %v342_v4 = vadd.f32 %v341_v3, %v320_v1 }
  0xd2   : > { %571 = dma.vmem_to_hbm [thread:$0]  (%p84_p2), %s389_s20, 16, %s391_s25, [#allocation5]  }
  0xd3   : > { %343 = vst [vmem:[#allocation6] sm:$0x1] %v342_v4 }
  0xd4   : > { %573 = dma.vmem_to_hbm [thread:$0]  (%p84_p2), %s401_s29, 16, %s403_s6, [#allocation5]  }
  0xd5   : > { %726 = dma.done.wait (%p84_p2), [#allocation5], 32  }
  0xd6   : > { %728 = vsyncadd (%p84_p2), [#allocation5], 4294967264 }
  0xd7 PF: > { %p587_p5 = scmp.ge.s32.totalorder %s747_s18, 2  ;;  %s424_s7 = sand.u32 1, %s735_s15  }
  0xd8   : > { %s425_s9 = scalar_lea.sflag [#allocation3], %s424_s7 }
  0xd9   : > { %p580_p8 = pnand %p587_p5, %p823_p6 }
  0xdb   : > { %p581_p9 = pneg %p580_p8 }
  0xdd   : > { %730 = dma.done.wait (%p581_p9), %s425_s9, 512  }
  0xde   : > { %732 = vsyncadd (%p581_p9), %s425_s9, 4294966784  ;;  %p16_p10 = scmp.ge.s32.totalorder %s804_s21, 4   ;;  %s910_s15 = smov %s739_s16 }
  0xdf   : > { %s911_s16 = smov %s743_s17  ;;  %s912_s17 = smov %s815_s24 }
  0xe0   : > { %s913_s18 = smov %s804_s21  ;;  %18 = sbr.rel (!%p16_p10) target bundleno = 4 (0x4), region = 83 }
  0xe5   :  { %431 = vsyncpa [#allocation3], 1 }
  0xe6   :  { %433 = vsyncpa [#allocation3 + $0x1], 1 }
  0xe7   :  { %434 = vsyncpa [#allocation5], 1 }

</bundles_post_ra>
